<compile_context>
chip_gen: v6e
topology: v6e:2x2x1
jax: 0.10.0
libtpu: 0.0.40
codegen_flags: <defaults>
</compile_context>

<pallas_src>
import functools

import jax
import jax.numpy as jnp
from jax import lax
from jax.experimental import pallas as pl
from jax.experimental.pallas import tpu as pltpu


def _lstm_kernel(x_ref, wih_ref, whh_ref, b_ref, wfc_ref, bfc_ref, out_ref,
                 *, seq_len, batch, hidden_size):
    T, B, H = seq_len, batch, hidden_size

    # ---- Hoisted input projection: one batched MXU matmul for all time steps.
    #      (T*B, I) @ (I, 4H) + bias  ->  (T*B, 4H); bias broadcast folded once.
    gates_x = (jnp.dot(x_ref[...], wih_ref[...],
                       preferred_element_type=jnp.float32)
               + b_ref[...])

    whh = whh_ref[...]                       # (H, 4H), loaded once into vregs

    # ---- Serial recurrence, fully unrolled (T is small & static).
    #      h / c are loop-carried vreg values, not VMEM scratch.
    h = jnp.zeros((B, H), jnp.float32)
    c = jnp.zeros((B, H), jnp.float32)
    for t in range(T):
        gates = gates_x[t * B:(t + 1) * B, :] + jnp.dot(
            h, whh, preferred_element_type=jnp.float32)          # (B, 4H)
        # TODO(synk): with 4H == 128 lanes, the four 32-lane slices could be
        # replaced by full-vreg sigmoid/tanh + pltpu.roll alignment (XLU/EUP
        # slots); kept as slices for clarity since it is a minor micro-opt.
        i_g = jax.nn.sigmoid(gates[:, 0 * H:1 * H])
        f_g = jax.nn.sigmoid(gates[:, 1 * H:2 * H])
        g_g = jnp.tanh(gates[:, 2 * H:3 * H])
        o_g = jax.nn.sigmoid(gates[:, 3 * H:4 * H])
        c = f_g * c + i_g * g_g
        h = o_g * jnp.tanh(c)

    # ---- Fused fc on the last time step's hidden state.
    out = jnp.dot(h, wfc_ref[...], preferred_element_type=jnp.float32) + bfc_ref[...]
    out_ref[...] = out.astype(out_ref.dtype)


def lightweight_lstm_forward(x, params):
    """x: (B, T, I) float32, batch-first (PyTorch convention). Returns (B, O)."""
    wih_t, whh_t, bias, wfc_t, bfc = params
    B, T, I = x.shape
    H = whh_t.shape[0]
    O = wfc_t.shape[1]

    # time-major, flattened to (T*B, I) so the input projection is one matmul
    x_tb = jnp.transpose(x, (1, 0, 2)).reshape(T * B, I)

    kernel = functools.partial(_lstm_kernel, seq_len=T, batch=B, hidden_size=H)

    flops = (2 * T * B * I * 4 * H        # hoisted input projection
             + 2 * T * B * H * 4 * H      # recurrent h @ W_hh
             + 2 * B * H * O)             # fc
    transcendentals = T * B * (4 * H + H)  # gate nonlinearities + tanh(c)
    bytes_accessed = 4 * (T * B * I + I * 4 * H + H * 4 * H + 4 * H
                          + H * O + O + B * O)

    vmem_spec = pl.BlockSpec(memory_space=pltpu.MemorySpace.VMEM)
    return pl.pallas_call(
        kernel,
        out_shape=jax.ShapeDtypeStruct((B, O), jnp.float32),
        in_specs=[vmem_spec] * 6,
        out_specs=vmem_spec,
        cost_estimate=pl.CostEstimate(flops=flops,
                                      transcendentals=transcendentals,
                                      bytes_accessed=bytes_accessed),
    )(x_tb, wih_t, whh_t, bias, wfc_t, bfc)


def init_params(key, input_size, hidden_size, output_size):
    """Deterministic parameter init, PyTorch-style shapes (then pre-transposed)."""
    ks = jax.random.split(key, 6)
    bound = 1.0 / jnp.sqrt(hidden_size)
    w_ih = jax.random.uniform(ks[0], (4 * hidden_size, input_size), jnp.float32, -bound, bound)
    w_hh = jax.random.uniform(ks[1], (4 * hidden_size, hidden_size), jnp.float32, -bound, bound)
    b_ih = jax.random.uniform(ks[2], (4 * hidden_size,), jnp.float32, -bound, bound)
    b_hh = jax.random.uniform(ks[3], (4 * hidden_size,), jnp.float32, -bound, bound)
    w_fc = jax.random.uniform(ks[4], (output_size, hidden_size), jnp.float32, -bound, bound)
    b_fc = jax.random.uniform(ks[5], (output_size,), jnp.float32, -bound, bound)
    # pre-transpose / combine for the kernel
    return (w_ih.T, w_hh.T, (b_ih + b_hh)[None, :], w_fc.T, b_fc[None, :])


def reference_forward(x, params):
    """Pure-JAX reference of the PyTorch forward (for correctness check)."""
    wih_t, whh_t, bias, wfc_t, bfc = params
    H = whh_t.shape[0]
    B = x.shape[0]

    def step(carry, x_t):
        h, c = carry
        gates = x_t @ wih_t + h @ whh_t + bias
        i = jax.nn.sigmoid(gates[:, 0 * H:1 * H])
        f = jax.nn.sigmoid(gates[:, 1 * H:2 * H])
        g = jnp.tanh(gates[:, 2 * H:3 * H])
        o = jax.nn.sigmoid(gates[:, 3 * H:4 * H])
        c = f * c + i * g
        h = o * jnp.tanh(c)
        return (h, c), None

    h0 = jnp.zeros((B, H), jnp.float32)
    c0 = jnp.zeros((B, H), jnp.float32)
    (h_last, _), _ = lax.scan(step, (h0, c0), jnp.transpose(x, (1, 0, 2)))
    return h_last @ wfc_t + bfc


if __name__ == "__main__":
    # Small shapes consistent with LightweightLSTM(input_size=16, hidden_size=32,
    # output_size=8, num_layers=1, width_multiplier=1.0)
    B, T, I, H, O = 8, 8, 16, 32, 8

    key = jax.random.PRNGKey(0)
    k_x, k_p = jax.random.split(key)
    x = jax.random.normal(k_x, (B, T, I), jnp.float32)
    params = init_params(k_p, I, H, O)

    out = lightweight_lstm_forward(x, params)
    out = jax.block_until_ready(out)

    ref = reference_forward(x, params)
    assert out.shape == (B, O)
    assert jnp.allclose(out, ref, atol=1e-5, rtol=1e-5), "Pallas LSTM mismatch vs reference"

    print("KERNEL_OK")
</pallas_src>

<mosaic_0001>
module attributes {stable_mosaic.version = 11 : i64} {
  func.func @_lstm_kernel(%arg0: memref<64x16xf32, #tpu.memory_space<vmem>>, %arg1: memref<16x128xf32, #tpu.memory_space<vmem>>, %arg2: memref<32x128xf32, #tpu.memory_space<vmem>>, %arg3: memref<1x128xf32, #tpu.memory_space<vmem>>, %arg4: memref<32x8xf32, #tpu.memory_space<vmem>>, %arg5: memref<1x8xf32, #tpu.memory_space<vmem>>, %arg6: memref<8x8xf32, #tpu.memory_space<vmem>>) attributes {dimension_semantics = [], scalar_prefetch = 0 : i64, scratch_operands = 0 : i64, tpu.core_type = #tpu.core_type<tc>} {
    %c0 = arith.constant 0 : index
    %c0_0 = arith.constant 0 : index
    %0 = vector.load %arg0[%c0, %c0_0] : memref<64x16xf32, #tpu.memory_space<vmem>>, vector<64x16xf32>
    %c0_1 = arith.constant 0 : index
    %c0_2 = arith.constant 0 : index
    %1 = vector.load %arg1[%c0_1, %c0_2] : memref<16x128xf32, #tpu.memory_space<vmem>>, vector<16x128xf32>
    %cst = arith.constant dense<0.000000e+00> : vector<64x128xf32>
    %2 = tpu.matmul %0, %1, %cst {dimension_numbers = #tpu.dot_dimension_numbers<[1], [0], [0], [1], [0, 0, 1, 1], [], []>} : vector<64x16xf32>, vector<16x128xf32>, vector<64x128xf32> -> vector<64x128xf32>
    %c0_3 = arith.constant 0 : index
    %c0_4 = arith.constant 0 : index
    %3 = vector.load %arg3[%c0_3, %c0_4] : memref<1x128xf32, #tpu.memory_space<vmem>>, vector<1x128xf32>
    %4 = vector.broadcast %3 : vector<1x128xf32> to vector<64x128xf32>
    %5 = arith.addf %2, %4 : vector<64x128xf32>
    %c0_5 = arith.constant 0 : index
    %c0_6 = arith.constant 0 : index
    %6 = vector.load %arg2[%c0_5, %c0_6] : memref<32x128xf32, #tpu.memory_space<vmem>>, vector<32x128xf32>
    %cst_7 = arith.constant 0.000000e+00 : f32
    %7 = vector.broadcast %cst_7 : f32 to vector<8x32xf32>
    %cst_8 = arith.constant 0.000000e+00 : f32
    %8 = vector.broadcast %cst_8 : f32 to vector<8x32xf32>
    %9 = vector.extract_strided_slice %5 {offsets = [0, 0], sizes = [8, 128], strides = [1, 1]} : vector<64x128xf32> to vector<8x128xf32>
    %cst_9 = arith.constant dense<0.000000e+00> : vector<8x128xf32>
    %10 = tpu.matmul %7, %6, %cst_9 {dimension_numbers = #tpu.dot_dimension_numbers<[1], [0], [0], [1], [0, 0, 1, 1], [], []>} : vector<8x32xf32>, vector<32x128xf32>, vector<8x128xf32> -> vector<8x128xf32>
    %11 = arith.addf %9, %10 : vector<8x128xf32>
    %12 = vector.extract_strided_slice %11 {offsets = [0, 0], sizes = [8, 32], strides = [1, 1]} : vector<8x128xf32> to vector<8x32xf32>
    %13 = arith.negf %12 : vector<8x32xf32>
    %14 = math.exp %13 : vector<8x32xf32>
    %cst_10 = arith.constant 1.000000e+00 : f32
    %15 = vector.broadcast %cst_10 : f32 to vector<8x32xf32>
    %16 = arith.addf %15, %14 : vector<8x32xf32>
    %17 = arith.divf %15, %16 : vector<8x32xf32>
    %18 = vector.extract_strided_slice %11 {offsets = [0, 32], sizes = [8, 32], strides = [1, 1]} : vector<8x128xf32> to vector<8x32xf32>
    %19 = arith.negf %18 : vector<8x32xf32>
    %20 = math.exp %19 : vector<8x32xf32>
    %cst_11 = arith.constant 1.000000e+00 : f32
    %21 = vector.broadcast %cst_11 : f32 to vector<8x32xf32>
    %22 = arith.addf %21, %20 : vector<8x32xf32>
    %23 = arith.divf %21, %22 : vector<8x32xf32>
    %24 = vector.extract_strided_slice %11 {offsets = [0, 64], sizes = [8, 32], strides = [1, 1]} : vector<8x128xf32> to vector<8x32xf32>
    %25 = math.tanh %24 : vector<8x32xf32>
    %26 = vector.extract_strided_slice %11 {offsets = [0, 96], sizes = [8, 32], strides = [1, 1]} : vector<8x128xf32> to vector<8x32xf32>
    %27 = arith.negf %26 : vector<8x32xf32>
    %28 = math.exp %27 : vector<8x32xf32>
    %cst_12 = arith.constant 1.000000e+00 : f32
    %29 = vector.broadcast %cst_12 : f32 to vector<8x32xf32>
    %30 = arith.addf %29, %28 : vector<8x32xf32>
    %31 = arith.divf %29, %30 : vector<8x32xf32>
    %32 = arith.mulf %23, %8 : vector<8x32xf32>
    %33 = arith.mulf %17, %25 : vector<8x32xf32>
    %34 = arith.addf %32, %33 : vector<8x32xf32>
    %35 = math.tanh %34 : vector<8x32xf32>
    %36 = arith.mulf %31, %35 : vector<8x32xf32>
    %37 = vector.extract_strided_slice %5 {offsets = [8, 0], sizes = [8, 128], strides = [1, 1]} : vector<64x128xf32> to vector<8x128xf32>
    %cst_13 = arith.constant dense<0.000000e+00> : vector<8x128xf32>
    %38 = tpu.matmul %36, %6, %cst_13 {dimension_numbers = #tpu.dot_dimension_numbers<[1], [0], [0], [1], [0, 0, 1, 1], [], []>} : vector<8x32xf32>, vector<32x128xf32>, vector<8x128xf32> -> vector<8x128xf32>
    %39 = arith.addf %37, %38 : vector<8x128xf32>
    %40 = vector.extract_strided_slice %39 {offsets = [0, 0], sizes = [8, 32], strides = [1, 1]} : vector<8x128xf32> to vector<8x32xf32>
    %41 = arith.negf %40 : vector<8x32xf32>
    %42 = math.exp %41 : vector<8x32xf32>
    %cst_14 = arith.constant 1.000000e+00 : f32
    %43 = vector.broadcast %cst_14 : f32 to vector<8x32xf32>
    %44 = arith.addf %43, %42 : vector<8x32xf32>
    %45 = arith.divf %43, %44 : vector<8x32xf32>
    %46 = vector.extract_strided_slice %39 {offsets = [0, 32], sizes = [8, 32], strides = [1, 1]} : vector<8x128xf32> to vector<8x32xf32>
    %47 = arith.negf %46 : vector<8x32xf32>
    %48 = math.exp %47 : vector<8x32xf32>
    %cst_15 = arith.constant 1.000000e+00 : f32
    %49 = vector.broadcast %cst_15 : f32 to vector<8x32xf32>
    %50 = arith.addf %49, %48 : vector<8x32xf32>
    %51 = arith.divf %49, %50 : vector<8x32xf32>
    %52 = vector.extract_strided_slice %39 {offsets = [0, 64], sizes = [8, 32], strides = [1, 1]} : vector<8x128xf32> to vector<8x32xf32>
    %53 = math.tanh %52 : vector<8x32xf32>
    %54 = vector.extract_strided_slice %39 {offsets = [0, 96], sizes = [8, 32], strides = [1, 1]} : vector<8x128xf32> to vector<8x32xf32>
    %55 = arith.negf %54 : vector<8x32xf32>
    %56 = math.exp %55 : vector<8x32xf32>
    %cst_16 = arith.constant 1.000000e+00 : f32
    %57 = vector.broadcast %cst_16 : f32 to vector<8x32xf32>
    %58 = arith.addf %57, %56 : vector<8x32xf32>
    %59 = arith.divf %57, %58 : vector<8x32xf32>
    %60 = arith.mulf %51, %34 : vector<8x32xf32>
    %61 = arith.mulf %45, %53 : vector<8x32xf32>
    %62 = arith.addf %60, %61 : vector<8x32xf32>
    %63 = math.tanh %62 : vector<8x32xf32>
    %64 = arith.mulf %59, %63 : vector<8x32xf32>
    %65 = vector.extract_strided_slice %5 {offsets = [16, 0], sizes = [8, 128], strides = [1, 1]} : vector<64x128xf32> to vector<8x128xf32>
    %cst_17 = arith.constant dense<0.000000e+00> : vector<8x128xf32>
    %66 = tpu.matmul %64, %6, %cst_17 {dimension_numbers = #tpu.dot_dimension_numbers<[1], [0], [0], [1], [0, 0, 1, 1], [], []>} : vector<8x32xf32>, vector<32x128xf32>, vector<8x128xf32> -> vector<8x128xf32>
    %67 = arith.addf %65, %66 : vector<8x128xf32>
    %68 = vector.extract_strided_slice %67 {offsets = [0, 0], sizes = [8, 32], strides = [1, 1]} : vector<8x128xf32> to vector<8x32xf32>
    %69 = arith.negf %68 : vector<8x32xf32>
    %70 = math.exp %69 : vector<8x32xf32>
    %cst_18 = arith.constant 1.000000e+00 : f32
    %71 = vector.broadcast %cst_18 : f32 to vector<8x32xf32>
    %72 = arith.addf %71, %70 : vector<8x32xf32>
    %73 = arith.divf %71, %72 : vector<8x32xf32>
    %74 = vector.extract_strided_slice %67 {offsets = [0, 32], sizes = [8, 32], strides = [1, 1]} : vector<8x128xf32> to vector<8x32xf32>
    %75 = arith.negf %74 : vector<8x32xf32>
    %76 = math.exp %75 : vector<8x32xf32>
    %cst_19 = arith.constant 1.000000e+00 : f32
    %77 = vector.broadcast %cst_19 : f32 to vector<8x32xf32>
    %78 = arith.addf %77, %76 : vector<8x32xf32>
    %79 = arith.divf %77, %78 : vector<8x32xf32>
    %80 = vector.extract_strided_slice %67 {offsets = [0, 64], sizes = [8, 32], strides = [1, 1]} : vector<8x128xf32> to vector<8x32xf32>
    %81 = math.tanh %80 : vector<8x32xf32>
    %82 = vector.extract_strided_slice %67 {offsets = [0, 96], sizes = [8, 32], strides = [1, 1]} : vector<8x128xf32> to vector<8x32xf32>
    %83 = arith.negf %82 : vector<8x32xf32>
    %84 = math.exp %83 : vector<8x32xf32>
    %cst_20 = arith.constant 1.000000e+00 : f32
    %85 = vector.broadcast %cst_20 : f32 to vector<8x32xf32>
    %86 = arith.addf %85, %84 : vector<8x32xf32>
    %87 = arith.divf %85, %86 : vector<8x32xf32>
    %88 = arith.mulf %79, %62 : vector<8x32xf32>
    %89 = arith.mulf %73, %81 : vector<8x32xf32>
    %90 = arith.addf %88, %89 : vector<8x32xf32>
    %91 = math.tanh %90 : vector<8x32xf32>
    %92 = arith.mulf %87, %91 : vector<8x32xf32>
    %93 = vector.extract_strided_slice %5 {offsets = [24, 0], sizes = [8, 128], strides = [1, 1]} : vector<64x128xf32> to vector<8x128xf32>
    %cst_21 = arith.constant dense<0.000000e+00> : vector<8x128xf32>
    %94 = tpu.matmul %92, %6, %cst_21 {dimension_numbers = #tpu.dot_dimension_numbers<[1], [0], [0], [1], [0, 0, 1, 1], [], []>} : vector<8x32xf32>, vector<32x128xf32>, vector<8x128xf32> -> vector<8x128xf32>
    %95 = arith.addf %93, %94 : vector<8x128xf32>
    %96 = vector.extract_strided_slice %95 {offsets = [0, 0], sizes = [8, 32], strides = [1, 1]} : vector<8x128xf32> to vector<8x32xf32>
    %97 = arith.negf %96 : vector<8x32xf32>
    %98 = math.exp %97 : vector<8x32xf32>
    %cst_22 = arith.constant 1.000000e+00 : f32
    %99 = vector.broadcast %cst_22 : f32 to vector<8x32xf32>
    %100 = arith.addf %99, %98 : vector<8x32xf32>
    %101 = arith.divf %99, %100 : vector<8x32xf32>
    %102 = vector.extract_strided_slice %95 {offsets = [0, 32], sizes = [8, 32], strides = [1, 1]} : vector<8x128xf32> to vector<8x32xf32>
    %103 = arith.negf %102 : vector<8x32xf32>
    %104 = math.exp %103 : vector<8x32xf32>
    %cst_23 = arith.constant 1.000000e+00 : f32
    %105 = vector.broadcast %cst_23 : f32 to vector<8x32xf32>
    %106 = arith.addf %105, %104 : vector<8x32xf32>
    %107 = arith.divf %105, %106 : vector<8x32xf32>
    %108 = vector.extract_strided_slice %95 {offsets = [0, 64], sizes = [8, 32], strides = [1, 1]} : vector<8x128xf32> to vector<8x32xf32>
    %109 = math.tanh %108 : vector<8x32xf32>
    %110 = vector.extract_strided_slice %95 {offsets = [0, 96], sizes = [8, 32], strides = [1, 1]} : vector<8x128xf32> to vector<8x32xf32>
    %111 = arith.negf %110 : vector<8x32xf32>
    %112 = math.exp %111 : vector<8x32xf32>
    %cst_24 = arith.constant 1.000000e+00 : f32
    %113 = vector.broadcast %cst_24 : f32 to vector<8x32xf32>
    %114 = arith.addf %113, %112 : vector<8x32xf32>
    %115 = arith.divf %113, %114 : vector<8x32xf32>
    %116 = arith.mulf %107, %90 : vector<8x32xf32>
    %117 = arith.mulf %101, %109 : vector<8x32xf32>
    %118 = arith.addf %116, %117 : vector<8x32xf32>
    %119 = math.tanh %118 : vector<8x32xf32>
    %120 = arith.mulf %115, %119 : vector<8x32xf32>
    %121 = vector.extract_strided_slice %5 {offsets = [32, 0], sizes = [8, 128], strides = [1, 1]} : vector<64x128xf32> to vector<8x128xf32>
    %cst_25 = arith.constant dense<0.000000e+00> : vector<8x128xf32>
    %122 = tpu.matmul %120, %6, %cst_25 {dimension_numbers = #tpu.dot_dimension_numbers<[1], [0], [0], [1], [0, 0, 1, 1], [], []>} : vector<8x32xf32>, vector<32x128xf32>, vector<8x128xf32> -> vector<8x128xf32>
    %123 = arith.addf %121, %122 : vector<8x128xf32>
    %124 = vector.extract_strided_slice %123 {offsets = [0, 0], sizes = [8, 32], strides = [1, 1]} : vector<8x128xf32> to vector<8x32xf32>
    %125 = arith.negf %124 : vector<8x32xf32>
    %126 = math.exp %125 : vector<8x32xf32>
    %cst_26 = arith.constant 1.000000e+00 : f32
    %127 = vector.broadcast %cst_26 : f32 to vector<8x32xf32>
    %128 = arith.addf %127, %126 : vector<8x32xf32>
    %129 = arith.divf %127, %128 : vector<8x32xf32>
    %130 = vector.extract_strided_slice %123 {offsets = [0, 32], sizes = [8, 32], strides = [1, 1]} : vector<8x128xf32> to vector<8x32xf32>
    %131 = arith.negf %130 : vector<8x32xf32>
    %132 = math.exp %131 : vector<8x32xf32>
    %cst_27 = arith.constant 1.000000e+00 : f32
    %133 = vector.broadcast %cst_27 : f32 to vector<8x32xf32>
    %134 = arith.addf %133, %132 : vector<8x32xf32>
    %135 = arith.divf %133, %134 : vector<8x32xf32>
    %136 = vector.extract_strided_slice %123 {offsets = [0, 64], sizes = [8, 32], strides = [1, 1]} : vector<8x128xf32> to vector<8x32xf32>
    %137 = math.tanh %136 : vector<8x32xf32>
    %138 = vector.extract_strided_slice %123 {offsets = [0, 96], sizes = [8, 32], strides = [1, 1]} : vector<8x128xf32> to vector<8x32xf32>
    %139 = arith.negf %138 : vector<8x32xf32>
    %140 = math.exp %139 : vector<8x32xf32>
    %cst_28 = arith.constant 1.000000e+00 : f32
    %141 = vector.broadcast %cst_28 : f32 to vector<8x32xf32>
    %142 = arith.addf %141, %140 : vector<8x32xf32>
    %143 = arith.divf %141, %142 : vector<8x32xf32>
    %144 = arith.mulf %135, %118 : vector<8x32xf32>
    %145 = arith.mulf %129, %137 : vector<8x32xf32>
    %146 = arith.addf %144, %145 : vector<8x32xf32>
    %147 = math.tanh %146 : vector<8x32xf32>
    %148 = arith.mulf %143, %147 : vector<8x32xf32>
    %149 = vector.extract_strided_slice %5 {offsets = [40, 0], sizes = [8, 128], strides = [1, 1]} : vector<64x128xf32> to vector<8x128xf32>
    %cst_29 = arith.constant dense<0.000000e+00> : vector<8x128xf32>
    %150 = tpu.matmul %148, %6, %cst_29 {dimension_numbers = #tpu.dot_dimension_numbers<[1], [0], [0], [1], [0, 0, 1, 1], [], []>} : vector<8x32xf32>, vector<32x128xf32>, vector<8x128xf32> -> vector<8x128xf32>
    %151 = arith.addf %149, %150 : vector<8x128xf32>
    %152 = vector.extract_strided_slice %151 {offsets = [0, 0], sizes = [8, 32], strides = [1, 1]} : vector<8x128xf32> to vector<8x32xf32>
    %153 = arith.negf %152 : vector<8x32xf32>
    %154 = math.exp %153 : vector<8x32xf32>
    %cst_30 = arith.constant 1.000000e+00 : f32
    %155 = vector.broadcast %cst_30 : f32 to vector<8x32xf32>
    %156 = arith.addf %155, %154 : vector<8x32xf32>
    %157 = arith.divf %155, %156 : vector<8x32xf32>
    %158 = vector.extract_strided_slice %151 {offsets = [0, 32], sizes = [8, 32], strides = [1, 1]} : vector<8x128xf32> to vector<8x32xf32>
    %159 = arith.negf %158 : vector<8x32xf32>
    %160 = math.exp %159 : vector<8x32xf32>
    %cst_31 = arith.constant 1.000000e+00 : f32
    %161 = vector.broadcast %cst_31 : f32 to vector<8x32xf32>
    %162 = arith.addf %161, %160 : vector<8x32xf32>
    %163 = arith.divf %161, %162 : vector<8x32xf32>
    %164 = vector.extract_strided_slice %151 {offsets = [0, 64], sizes = [8, 32], strides = [1, 1]} : vector<8x128xf32> to vector<8x32xf32>
    %165 = math.tanh %164 : vector<8x32xf32>
    %166 = vector.extract_strided_slice %151 {offsets = [0, 96], sizes = [8, 32], strides = [1, 1]} : vector<8x128xf32> to vector<8x32xf32>
    %167 = arith.negf %166 : vector<8x32xf32>
    %168 = math.exp %167 : vector<8x32xf32>
    %cst_32 = arith.constant 1.000000e+00 : f32
    %169 = vector.broadcast %cst_32 : f32 to vector<8x32xf32>
    %170 = arith.addf %169, %168 : vector<8x32xf32>
    %171 = arith.divf %169, %170 : vector<8x32xf32>
    %172 = arith.mulf %163, %146 : vector<8x32xf32>
    %173 = arith.mulf %157, %165 : vector<8x32xf32>
    %174 = arith.addf %172, %173 : vector<8x32xf32>
    %175 = math.tanh %174 : vector<8x32xf32>
    %176 = arith.mulf %171, %175 : vector<8x32xf32>
    %177 = vector.extract_strided_slice %5 {offsets = [48, 0], sizes = [8, 128], strides = [1, 1]} : vector<64x128xf32> to vector<8x128xf32>
    %cst_33 = arith.constant dense<0.000000e+00> : vector<8x128xf32>
    %178 = tpu.matmul %176, %6, %cst_33 {dimension_numbers = #tpu.dot_dimension_numbers<[1], [0], [0], [1], [0, 0, 1, 1], [], []>} : vector<8x32xf32>, vector<32x128xf32>, vector<8x128xf32> -> vector<8x128xf32>
    %179 = arith.addf %177, %178 : vector<8x128xf32>
    %180 = vector.extract_strided_slice %179 {offsets = [0, 0], sizes = [8, 32], strides = [1, 1]} : vector<8x128xf32> to vector<8x32xf32>
    %181 = arith.negf %180 : vector<8x32xf32>
    %182 = math.exp %181 : vector<8x32xf32>
    %cst_34 = arith.constant 1.000000e+00 : f32
    %183 = vector.broadcast %cst_34 : f32 to vector<8x32xf32>
    %184 = arith.addf %183, %182 : vector<8x32xf32>
    %185 = arith.divf %183, %184 : vector<8x32xf32>
    %186 = vector.extract_strided_slice %179 {offsets = [0, 32], sizes = [8, 32], strides = [1, 1]} : vector<8x128xf32> to vector<8x32xf32>
    %187 = arith.negf %186 : vector<8x32xf32>
    %188 = math.exp %187 : vector<8x32xf32>
    %cst_35 = arith.constant 1.000000e+00 : f32
    %189 = vector.broadcast %cst_35 : f32 to vector<8x32xf32>
    %190 = arith.addf %189, %188 : vector<8x32xf32>
    %191 = arith.divf %189, %190 : vector<8x32xf32>
    %192 = vector.extract_strided_slice %179 {offsets = [0, 64], sizes = [8, 32], strides = [1, 1]} : vector<8x128xf32> to vector<8x32xf32>
    %193 = math.tanh %192 : vector<8x32xf32>
    %194 = vector.extract_strided_slice %179 {offsets = [0, 96], sizes = [8, 32], strides = [1, 1]} : vector<8x128xf32> to vector<8x32xf32>
    %195 = arith.negf %194 : vector<8x32xf32>
    %196 = math.exp %195 : vector<8x32xf32>
    %cst_36 = arith.constant 1.000000e+00 : f32
    %197 = vector.broadcast %cst_36 : f32 to vector<8x32xf32>
    %198 = arith.addf %197, %196 : vector<8x32xf32>
    %199 = arith.divf %197, %198 : vector<8x32xf32>
    %200 = arith.mulf %191, %174 : vector<8x32xf32>
    %201 = arith.mulf %185, %193 : vector<8x32xf32>
    %202 = arith.addf %200, %201 : vector<8x32xf32>
    %203 = math.tanh %202 : vector<8x32xf32>
    %204 = arith.mulf %199, %203 : vector<8x32xf32>
    %205 = vector.extract_strided_slice %5 {offsets = [56, 0], sizes = [8, 128], strides = [1, 1]} : vector<64x128xf32> to vector<8x128xf32>
    %cst_37 = arith.constant dense<0.000000e+00> : vector<8x128xf32>
    %206 = tpu.matmul %204, %6, %cst_37 {dimension_numbers = #tpu.dot_dimension_numbers<[1], [0], [0], [1], [0, 0, 1, 1], [], []>} : vector<8x32xf32>, vector<32x128xf32>, vector<8x128xf32> -> vector<8x128xf32>
    %207 = arith.addf %205, %206 : vector<8x128xf32>
    %208 = vector.extract_strided_slice %207 {offsets = [0, 0], sizes = [8, 32], strides = [1, 1]} : vector<8x128xf32> to vector<8x32xf32>
    %209 = arith.negf %208 : vector<8x32xf32>
    %210 = math.exp %209 : vector<8x32xf32>
    %cst_38 = arith.constant 1.000000e+00 : f32
    %211 = vector.broadcast %cst_38 : f32 to vector<8x32xf32>
    %212 = arith.addf %211, %210 : vector<8x32xf32>
    %213 = arith.divf %211, %212 : vector<8x32xf32>
    %214 = vector.extract_strided_slice %207 {offsets = [0, 32], sizes = [8, 32], strides = [1, 1]} : vector<8x128xf32> to vector<8x32xf32>
    %215 = arith.negf %214 : vector<8x32xf32>
    %216 = math.exp %215 : vector<8x32xf32>
    %cst_39 = arith.constant 1.000000e+00 : f32
    %217 = vector.broadcast %cst_39 : f32 to vector<8x32xf32>
    %218 = arith.addf %217, %216 : vector<8x32xf32>
    %219 = arith.divf %217, %218 : vector<8x32xf32>
    %220 = vector.extract_strided_slice %207 {offsets = [0, 64], sizes = [8, 32], strides = [1, 1]} : vector<8x128xf32> to vector<8x32xf32>
    %221 = math.tanh %220 : vector<8x32xf32>
    %222 = vector.extract_strided_slice %207 {offsets = [0, 96], sizes = [8, 32], strides = [1, 1]} : vector<8x128xf32> to vector<8x32xf32>
    %223 = arith.negf %222 : vector<8x32xf32>
    %224 = math.exp %223 : vector<8x32xf32>
    %cst_40 = arith.constant 1.000000e+00 : f32
    %225 = vector.broadcast %cst_40 : f32 to vector<8x32xf32>
    %226 = arith.addf %225, %224 : vector<8x32xf32>
    %227 = arith.divf %225, %226 : vector<8x32xf32>
    %228 = arith.mulf %219, %202 : vector<8x32xf32>
    %229 = arith.mulf %213, %221 : vector<8x32xf32>
    %230 = arith.addf %228, %229 : vector<8x32xf32>
    %231 = math.tanh %230 : vector<8x32xf32>
    %232 = arith.mulf %227, %231 : vector<8x32xf32>
    %c0_41 = arith.constant 0 : index
    %c0_42 = arith.constant 0 : index
    %233 = vector.load %arg4[%c0_41, %c0_42] : memref<32x8xf32, #tpu.memory_space<vmem>>, vector<32x8xf32>
    %cst_43 = arith.constant dense<0.000000e+00> : vector<8x8xf32>
    %234 = tpu.matmul %232, %233, %cst_43 {dimension_numbers = #tpu.dot_dimension_numbers<[1], [0], [0], [1], [0, 0, 1, 1], [], []>} : vector<8x32xf32>, vector<32x8xf32>, vector<8x8xf32> -> vector<8x8xf32>
    %c0_44 = arith.constant 0 : index
    %c0_45 = arith.constant 0 : index
    %235 = vector.load %arg5[%c0_44, %c0_45] : memref<1x8xf32, #tpu.memory_space<vmem>>, vector<1x8xf32>
    %236 = vector.broadcast %235 : vector<1x8xf32> to vector<8x8xf32>
    %237 = arith.addf %234, %236 : vector<8x8xf32>
    %c0_46 = arith.constant 0 : index
    %c0_47 = arith.constant 0 : index
    %238 = vector.load %arg6[%c0_46, %c0_47] : memref<8x8xf32, #tpu.memory_space<vmem>>, vector<8x8xf32>
    tpu.vector_store %arg6[%c0_46, %c0_47], %237 {strides = array<i32>} : memref<8x8xf32, #tpu.memory_space<vmem>>, vector<8x8xf32>,
    return
  }
}

</mosaic_0001>

<bundles_post_ra>
// kernel: tpu_custom_call.1
= control target key start
LH: loop header
LB: loop body
LE: loop exit
PB: predicated region body
PF: predicated region fallthrough
CT: control target
= control target key end

     0   :  { %v1363_v3 = vmov 0.0   ;;  %vm41_vm0 = vcmask 130048   ;;  %s1631_s0 = inlined_call_operand.vmem [shape: f32[64,16], index: 0, kind: input, shape index: {}]   ;;  %s1632_s1 = inlined_call_operand.vmem [shape: f32[16,128], index: 1, kind: input, shape index: {}]   ;;  %s1633_s2 = inlined_call_operand.vmem [shape: f32[32,128], index: 2, kind: input, shape index: {}]   ;;  %s1634_s3 = inlined_call_operand.vmem [shape: f32[1,128], index: 3, kind: input, shape index: {}]   ;;  %s1635_s4 = inlined_call_operand.vmem [shape: f32[32,8], index: 4, kind: input, shape index: {}]   ;;  %s1636_s5 = inlined_call_operand.vmem [shape: f32[1,8], index: 5, kind: input, shape index: {}]   ;;  %s1637_s6 = inlined_call_operand.hbm [shape: f32[8,8], index: 6, kind: output, shape index: {}]  }
   0x1   :  { %v33_v0 = vld [vmem:[%s1632_s1 + $0x8] sm:$0xff]  ;;  %v1409_v1 = vld [vmem:[%s1633_s2 + $0x18] sm:$0xff]  ;;  %v32_v2 = vld [vmem:[%s1632_s1] sm:$0xff]  ;;  %1173 = vmatprep.subr.mxu1 %v1363_v3 }
   0x2   :  { %1157 = vmatprep.subr.mxu0 %v33_v0  ;;  %v24_v4 = vld [vmem:[%s1631_s0] sm:$0xff]  ;;  %1174 = vmatpush3.msra.mxu1 %v1409_v1  ;;  %v1422_v5 = vld [vmem:[%s1633_s2 + $0x10] sm:$0xff]  ;;  %v25_v6 = vld [vmem:[%s1631_s0 + $0x8] sm:$0xff] }
   0x3   :  { %1158 = vmatpush3.msra.mxu0 %v33_v0 }
   0x4   :  { %11 = vsyncpa [#allocation3], 0  ;;  %1159 = vmatprep.subr.mxu0 %v32_v2  ;;  %1175 = vmatprep.subr.mxu1 %v1363_v3  ;;  %v1432_v7 = vld [vmem:[%s1633_s2 + $0x8] sm:$0xff]  ;;  %v1440_v8 = vld [vmem:[%s1633_s2] sm:$0xff]  ;;  %vm1364_vm1 = vmmov 0   ;;  %s1365_s13 = smov 64  }
   0x5   :  { %1160 = vmatpush3.msra.mxu0 %v32_v2  ;;  %1161 = vmatprep.mubr.msk.f32.mxu0 %vm41_vm0, %v24_v4  ;;  %v1471_v10 = vld [vmem:[%s1634_s3] ss:$0 sm:$0xff]  ;;  %s1366_s3 = smov 32   ;;  %vm175_vm2 = vcmask 261120   ;;  %v26_v44 = vld [vmem:[%s1631_s0 + $0x10] sm:$0xff]  ;;  %v27_v45 = vld [vmem:[%s1631_s0 + $0x18] sm:$0xff] }
   0x6   :  { %1176 = vmatpush3.msra.mxu1 %v1422_v5  ;;  %1162 = vmatmul.mubr.msk.f32.vlgmr.msra.gmra.mxu0 %vm41_vm0, %v25_v6  ;;  %v28_v46 = vld [vmem:[%s1631_s0 + $0x20] sm:$0xff]  ;;  %v29_v47 = vld [vmem:[%s1631_s0 + $0x28] sm:$0xff]  ;;  %v30_v48 = vld [vmem:[%s1631_s0 + $0x30] sm:$0xff]  ;;  %s1367_s10 = smov [#allocation2]   ;;  %vm1060_vm3 = vcmask 64512  }
   0x7   :  { %1177 = vmatprep.subr.mxu1 %v1363_v3  ;;  %1181 = vmatprep.mubr.msk.f32.mxu1 %vm1364_vm1, %v1363_v3  ;;  %v31_v49 = vld [vmem:[%s1631_s0 + $0x38] sm:$0xff] }
   0x8   :  { %1178 = vmatpush3.msra.mxu1 %v1432_v7  ;;  %1195 = vmatprep.subr.mxu0 %v1363_v3 }
   0x9   :  { %1179 = vmatprep.subr.mxu1 %v1363_v3  ;;  %1196 = vmatpush3.msra.mxu0 %v1409_v1 }
   0xa   :  { %1180 = vmatpush3.msra.mxu1 %v1440_v8  ;;  %1197 = vmatprep.subr.mxu0 %v1363_v3 }
   0xb   :  { %1182 = vmatmul.mubr.f32.vlgmr.msra.gmra.mxu1 %v1363_v3  ;;  %1184 = vmatprep.subr.mxu1 %v1363_v3 }
   0xc   :  { %1185 = vmatpush3.msra.mxu1 %v1409_v1  ;;  %1192 = vmatprep.mubr.msk.f32.mxu1 %vm1364_vm1, %v1363_v3 }
   0xd   :  { %1186 = vmatprep.subr.mxu1 %v1363_v3  ;;  %1198 = vmatpush3.msra.mxu0 %v1422_v5 }
   0xe   :  { %1187 = vmatpush3.msra.mxu1 %v1422_v5  ;;  %1199 = vmatprep.subr.mxu0 %v1363_v3 }
   0xf   :  { %1188 = vmatprep.subr.mxu1 %v1363_v3  ;;  %1200 = vmatpush3.msra.mxu0 %v1432_v7 }
  0x10   :  { %1189 = vmatpush3.msra.mxu1 %v1432_v7  ;;  %1201 = vmatprep.subr.mxu0 %v1363_v3 }
  0x11   :  { %1190 = vmatprep.subr.mxu1 %v1363_v3  ;;  %1202 = vmatpush3.msra.mxu0 %v1440_v8 }
  0x12   :  { %1191 = vmatpush3.msra.mxu1 %v1440_v8  ;;  %1217 = vmatprep.subr.mxu0 %v1363_v3 }
  0x13   :  { %1206 = vmatprep.subr.mxu1 %v1363_v3  ;;  %1164 = vmatprep.mubr.msk.f32.mxu0 %vm41_vm0, %v26_v44 }
  0x14   :  { %1165 = vmatmul.mubr.msk.f32.gmra.mxu0 %vm41_vm0, %v27_v45 }
  0x15   :  { %1167 = vmatprep.mubr.msk.f32.mxu0 %vm41_vm0, %v28_v46 }
  0x18   :  { %1168 = vmatmul.mubr.msk.f32.gmra.mxu0 %vm41_vm0, %v29_v47 }
  0x19   :  { %1170 = vmatprep.mubr.msk.f32.mxu0 %vm41_vm0, %v30_v48 }
  0x1c   :  { %1171 = vmatmul.mubr.msk.f32.gmra.mxu0 %vm41_vm0, %v31_v49 }
  0x1d   :  { %1203 = vmatprep.mubr.msk.f32.mxu0 %vm1364_vm1, %v1363_v3 }
  0xc6   :  { %v1163_v9 = vpop.f32.mrf.mxu0 }
  0xc7   :  { %v138_v30 = vadd.f32 %v1163_v9, %v1471_v10 }
  0xc8   :  { %v132_v11 = vpop.f32.mrf.mxu0 }
  0xc9   :  { %v133_v12 = vadd.f32 %v1471_v10, %v132_v11 }
  0xcb   :  { %v245_v13 = vpop.f32.mrf.mxu1 }
  0xcc   :  { %v249_v14 = vadd.f32 %v245_v13, %v133_v12 }
  0xcd   :  { %v1183_v15 = vpop.f32.mrf.mxu1 }
  0xce   :  { %1277 = vtanh.f32 %v249_v14  ;;  %v1085_v17 = vmul.f32 -1.442695, %v249_v14 }
  0xd0   :  { %1279 = vpow2.f32 %v1085_v17 }
  0xd4   :  { %v1166_v54 = vpop.f32.mrf.mxu0 }
  0xd6   :  { %v142_v55 = vpop.f32.mrf.mxu0 }
  0xd7   :  { %v143_v60 = vadd.f32 %v1471_v10, %v142_v55 }
  0xd8   :  { %v1531_v56 = vpop.f32.mrf.mxu0 }
  0xda   :  { %v1533_v57 = vpop.f32.mrf.mxu0 }
  0xdb   :  { %v1278_v16 = vpop.eup %1277 }
  0xdc   :  { %259 = vrot.lane.b32.xlu0 %v1278_v16, %s1365_s13  ;;  %v1535_v58 = vpop.f32.mrf.mxu0 }
  0xdd   :  { %v1280_v18 = vpop.eup %1279 }
  0xde   :  { %v253_v19 = vadd.f32 1.0, %v1280_v18  ;;  %v1537_v59 = vpop.f32.mrf.mxu0 }
  0xe0   :  { %1281 = vrcp.f32 %v253_v19 }
  0xed   :  { %v1282_v20 = vpop.eup %1281 }
  0xee   :  { %v257_v23 = vmul.f32 0.0, %v1282_v20 }
 0x14e   :  { %v260_v21 = vpop.permute.xlu0 %259 }
 0x14f   :  { %v262_v22 = vmul.f32 %v1282_v20, %v260_v21 }
 0x151   :  { %264 = vrot.lane.b32.xlu0 %v262_v22, %s1366_s3 }
 0x1c3   :  { %v265_v24 = vpop.permute.xlu0 %264 }
 0x1c4   :  { %v267_v25 = vadd.f32 %v265_v24, %v257_v23 }
 0x1c6   :  { %1283 = vtanh.f32 %v267_v25 }
 0x1d3   :  { %v1284_v26 = vpop.eup %1283 }
 0x1d4   :  { %270 = vrot.lane.b32.xlu1 %v1284_v26, %s1365_s13 }
 0x246   :  { %v271_v27 = vpop.permute.xlu1 %270 }
 0x247   :  { %v273_v28 = vmul.f32 %v1282_v20, %v271_v27  ;;  %v148_v20 = vadd.f32 %v1166_v54, %v1471_v10 }
 0x249   :  { %275 = vrot.lane.b32.xlu1 %v273_v28, %s1366_s3 }
 0x2bb   :  { %v276_v29 = vpop.permute.xlu1 %275 }
 0x2bc   :  { %1193 = vmatmul.mubr.msk.f32.vlgmr.msra.gmra.mxu1 %vm175_vm2, %v276_v29 }
 0x2bd   :  { %1207 = vmatpush3.msra.mxu1 %v1409_v1  ;;  %1214 = vmatprep.mubr.msk.f32.mxu1 %vm1364_vm1, %v1363_v3 }
 0x2be   :  { %1208 = vmatprep.subr.mxu1 %v1363_v3 }
 0x2bf   :  { %1209 = vmatpush3.msra.mxu1 %v1422_v5 }
 0x2c0   :  { %1210 = vmatprep.subr.mxu1 %v1363_v3 }
 0x2c1   :  { %1211 = vmatpush3.msra.mxu1 %v1432_v7 }
 0x2c2   :  { %1212 = vmatprep.subr.mxu1 %v1363_v3 }
 0x2c3   :  { %1213 = vmatpush3.msra.mxu1 %v1440_v8 }
 0x2c4   :  { %1228 = vmatprep.subr.mxu1 %v1363_v3 }
 0x37c   :  { %v345_v31 = vpop.f32.mrf.mxu1 }
 0x37d   :  { %v349_v32 = vadd.f32 %v345_v31, %v138_v30 }
 0x37e   :  { %v1194_v33 = vpop.f32.mrf.mxu1 }
 0x37f   :  { %1285 = vtanh.f32 %v349_v32  ;;  %v1087_v35 = vmul.f32 -1.442695, %v349_v32 }
 0x381   :  { %1287 = vpow2.f32 %v1087_v35 }
 0x38c   :  { %v1286_v34 = vpop.eup %1285 }
 0x38d   :  { %359 = vrot.lane.b32.xlu0 %v1286_v34, %s1365_s13 }
 0x38e   :  { %v1288_v36 = vpop.eup %1287 }
 0x38f   :  { %v353_v37 = vadd.f32 1.0, %v1288_v36 }
 0x391   :  { %1289 = vrcp.f32 %v353_v37 }
 0x39e   :  { %v1290_v38 = vpop.eup %1289 }
 0x39f   :  { %v357_v41 = vmul.f32 %v1290_v38, %v267_v25 }
 0x3ff   :  { %v360_v39 = vpop.permute.xlu0 %359 }
 0x400   :  { %v362_v40 = vmul.f32 %v1290_v38, %v360_v39 }
 0x402   :  { %364 = vrot.lane.b32.xlu1 %v362_v40, %s1366_s3 }
 0x474   :  { %v365_v42 = vpop.permute.xlu1 %364 }
 0x475   :  { %v367_v43 = vadd.f32 %v365_v42, %v357_v41 }
 0x477   :  { %1291 = vtanh.f32 %v367_v43 }
 0x484   :  { %v1292_v50 = vpop.eup %1291 }
 0x485   :  { %370 = vrot.lane.b32.xlu0 %v1292_v50, %s1365_s13 }
 0x4f7   :  { %v371_v51 = vpop.permute.xlu0 %370 }
 0x4f8   :  { %v373_v52 = vmul.f32 %v1290_v38, %v371_v51  ;;  %v153_v38 = vadd.f32 %v1471_v10, %v1533_v57  ;;  %v158_v57 = vadd.f32 %v1531_v56, %v1471_v10 }
 0x4fa   :  { %375 = vrot.lane.b32.xlu1 %v373_v52, %s1366_s3 }
 0x56c   :  { %v376_v53 = vpop.permute.xlu1 %375 }
 0x56d   :  { %1204 = vmatmul.mubr.msk.f32.vlgmr.msra.gmra.mxu0 %vm175_vm2, %v376_v53 }
 0x56e   :  { %1218 = vmatpush3.msra.mxu0 %v1409_v1  ;;  %1225 = vmatprep.mubr.msk.f32.mxu0 %vm1364_vm1, %v1363_v3 }
 0x56f   :  { %1219 = vmatprep.subr.mxu0 %v1363_v3 }
 0x570   :  { %1220 = vmatpush3.msra.mxu0 %v1422_v5 }
 0x571   :  { %1221 = vmatprep.subr.mxu0 %v1363_v3 }
 0x572   :  { %1222 = vmatpush3.msra.mxu0 %v1432_v7 }
 0x573   :  { %1223 = vmatprep.subr.mxu0 %v1363_v3 }
 0x574   :  { %1224 = vmatpush3.msra.mxu0 %v1440_v8 }
 0x575   :  { %1239 = vmatprep.subr.mxu0 %v1363_v3 }
 0x62d   :  { %v445_v61 = vpop.f32.mrf.mxu0 }
 0x62e   :  { %v449_v62 = vadd.f32 %v445_v61, %v143_v60 }
 0x62f   :  { %v1205_v63 = vpop.f32.mrf.mxu0 }
 0x630   :  { %1293 = vtanh.f32 %v449_v62  ;;  %v1089_v2 = vmul.f32 -1.442695, %v449_v62 }
 0x632   :  { %1295 = vpow2.f32 %v1089_v2 }
 0x63d   :  { %v1294_v0 = vpop.eup %1293 }
 0x63e   :  { %459 = vrot.lane.b32.xlu0 %v1294_v0, %s1365_s13 }
 0x63f   :  { %v1296_v4 = vpop.eup %1295 }
 0x640   :  { %v453_v6 = vadd.f32 1.0, %v1296_v4 }
 0x642   :  { %1297 = vrcp.f32 %v453_v6 }
 0x64f   :  { %v1298_v9 = vpop.eup %1297 }
 0x650   :  { %v457_v13 = vmul.f32 %v1298_v9, %v367_v43 }
 0x6b0   :  { %v460_v11 = vpop.permute.xlu0 %459 }
 0x6b1   :  { %v462_v12 = vmul.f32 %v1298_v9, %v460_v11 }
 0x6b3   :  { %464 = vrot.lane.b32.xlu1 %v462_v12, %s1366_s3 }
 0x725   :  { %v465_v14 = vpop.permute.xlu1 %464 }
 0x726   :  { %v467_v15 = vadd.f32 %v465_v14, %v457_v13  ;;  %v163_v14 = vadd.f32 %v1471_v10, %v1537_v59 }
 0x728   :  { %1299 = vtanh.f32 %v467_v15 }
 0x735   :  { %v1300_v16 = vpop.eup %1299 }
 0x736   :  { %470 = vrot.lane.b32.xlu0 %v1300_v16, %s1365_s13 }
 0x7a8   :  { %v471_v17 = vpop.permute.xlu0 %470 }
 0x7a9   :  { %v473_v18 = vmul.f32 %v1298_v9, %v471_v17 }
 0x7ab   :  { %475 = vrot.lane.b32.xlu1 %v473_v18, %s1366_s3 }
 0x81d   :  { %v476_v19 = vpop.permute.xlu1 %475 }
 0x81e   :  { %1215 = vmatmul.mubr.msk.f32.vlgmr.msra.gmra.mxu1 %vm175_vm2, %v476_v19 }
 0x81f   :  { %1229 = vmatpush3.msra.mxu1 %v1409_v1  ;;  %1236 = vmatprep.mubr.msk.f32.mxu1 %vm1364_vm1, %v1363_v3 }
 0x820   :  { %1230 = vmatprep.subr.mxu1 %v1363_v3 }
 0x821   :  { %1231 = vmatpush3.msra.mxu1 %v1422_v5 }
 0x822   :  { %1232 = vmatprep.subr.mxu1 %v1363_v3 }
 0x823   :  { %1233 = vmatpush3.msra.mxu1 %v1432_v7 }
 0x824   :  { %1234 = vmatprep.subr.mxu1 %v1363_v3 }
 0x825   :  { %1235 = vmatpush3.msra.mxu1 %v1440_v8 }
 0x826   :  { %1250 = vmatprep.subr.mxu1 %v1363_v3 }
 0x8de   :  { %v545_v21 = vpop.f32.mrf.mxu1 }
 0x8df   :  { %v549_v22 = vadd.f32 %v545_v21, %v148_v20 }
 0x8e0   :  { %v1216_v23 = vpop.f32.mrf.mxu1 }
 0x8e1   :  { %1301 = vtanh.f32 %v549_v22  ;;  %v1091_v25 = vmul.f32 -1.442695, %v549_v22 }
 0x8e3   :  { %1303 = vpow2.f32 %v1091_v25 }
 0x8ee   :  { %v1302_v24 = vpop.eup %1301 }
 0x8ef   :  { %559 = vrot.lane.b32.xlu0 %v1302_v24, %s1365_s13 }
 0x8f0   :  { %v1304_v26 = vpop.eup %1303 }
 0x8f1   :  { %v553_v27 = vadd.f32 1.0, %v1304_v26 }
 0x8f3   :  { %1305 = vrcp.f32 %v553_v27 }
 0x900   :  { %v1306_v28 = vpop.eup %1305 }
 0x901   :  { %v557_v31 = vmul.f32 %v1306_v28, %v467_v15 }
 0x961   :  { %v560_v29 = vpop.permute.xlu0 %559 }
 0x962   :  { %v562_v30 = vmul.f32 %v1306_v28, %v560_v29 }
 0x964   :  { %564 = vrot.lane.b32.xlu1 %v562_v30, %s1366_s3 }
 0x9d6   :  { %v565_v32 = vpop.permute.xlu1 %564 }
 0x9d7   :  { %v567_v33 = vadd.f32 %v565_v32, %v557_v31  ;;  %v168_v31 = vadd.f32 %v1535_v58, %v1471_v10  ;;  %v977_v58 = vld [vmem:[%s1635_s4 + $0x18] sm:$0xff] }
 0x9d9   :  { %1307 = vtanh.f32 %v567_v33 }
 0x9e6   :  { %v1308_v34 = vpop.eup %1307 }
 0x9e7   :  { %570 = vrot.lane.b32.xlu0 %v1308_v34, %s1365_s13 }
 0xa59   :  { %v571_v35 = vpop.permute.xlu0 %570 }
 0xa5a   :  { %v573_v36 = vmul.f32 %v1306_v28, %v571_v35 }
 0xa5c   :  { %575 = vrot.lane.b32.xlu1 %v573_v36, %s1366_s3 }
 0xace   :  { %v576_v37 = vpop.permute.xlu1 %575 }
 0xacf   :  { %1226 = vmatmul.mubr.msk.f32.vlgmr.msra.gmra.mxu0 %vm175_vm2, %v576_v37 }
 0xad0   :  { %1240 = vmatpush3.msra.mxu0 %v1409_v1  ;;  %1247 = vmatprep.mubr.msk.f32.mxu0 %vm1364_vm1, %v1363_v3 }
 0xad1   :  { %1241 = vmatprep.subr.mxu0 %v1363_v3 }
 0xad2   :  { %1242 = vmatpush3.msra.mxu0 %v1422_v5 }
 0xad3   :  { %1243 = vmatprep.subr.mxu0 %v1363_v3 }
 0xad4   :  { %1244 = vmatpush3.msra.mxu0 %v1432_v7 }
 0xad5   :  { %1245 = vmatprep.subr.mxu0 %v1363_v3 }
 0xad6   :  { %1246 = vmatpush3.msra.mxu0 %v1440_v8 }
 0xad7   :  { %1261 = vmatprep.subr.mxu0 %v1363_v3 }
 0xb8f   :  { %v645_v39 = vpop.f32.mrf.mxu0 }
 0xb90   :  { %v649_v40 = vadd.f32 %v645_v39, %v153_v38 }
 0xb91   :  { %v1227_v41 = vpop.f32.mrf.mxu0 }
 0xb92   :  { %1309 = vtanh.f32 %v649_v40  ;;  %v1093_v43 = vmul.f32 -1.442695, %v649_v40 }
 0xb94   :  { %1311 = vpow2.f32 %v1093_v43 }
 0xb9f   :  { %v1310_v42 = vpop.eup %1309 }
 0xba0   :  { %659 = vrot.lane.b32.xlu0 %v1310_v42, %s1365_s13 }
 0xba1   :  { %v1312_v44 = vpop.eup %1311 }
 0xba2   :  { %v653_v45 = vadd.f32 1.0, %v1312_v44  ;;  %v976_v44 = vld [vmem:[%s1635_s4 + $0x10] sm:$0xff] }
 0xba4   :  { %1313 = vrcp.f32 %v653_v45  ;;  %v975_v45 = vld [vmem:[%s1635_s4 + $0x8] sm:$0xff] }
 0xbb1   :  { %v1314_v46 = vpop.eup %1313 }
 0xbb2   :  { %v657_v49 = vmul.f32 %v1314_v46, %v567_v33 }
 0xc12   :  { %v660_v47 = vpop.permute.xlu0 %659 }
 0xc13   :  { %v662_v48 = vmul.f32 %v1314_v46, %v660_v47 }
 0xc15   :  { %664 = vrot.lane.b32.xlu1 %v662_v48, %s1366_s3 }
 0xc87   :  { %v665_v50 = vpop.permute.xlu1 %664 }
 0xc88   :  { %v667_v51 = vadd.f32 %v665_v50, %v657_v49 }
 0xc8a   :  { %1315 = vtanh.f32 %v667_v51 }
 0xc97   :  { %v1316_v52 = vpop.eup %1315 }
 0xc98   :  { %670 = vrot.lane.b32.xlu0 %v1316_v52, %s1365_s13 }
 0xd0a   :  { %v671_v53 = vpop.permute.xlu0 %670 }
 0xd0b   :  { %v673_v54 = vmul.f32 %v1314_v46, %v671_v53  ;;  %v974_v46 = vld [vmem:[%s1635_s4] sm:$0xff]  ;;  %s1068_s4 = sshll.u32 %s1367_s10, 4  ;;  %s1069_s4 = int_to_ptr.vmem [resolvable:$true] %s1068_s4 }
 0xd0c   :  { %s1341_s11 = scalar_lea.vmem %s1069_s4, 128  ;;  %p1346_p1 = scmp.lt.s32.totalorder %s1069_s4, %s1069_s4 }
 0xd0d   :  { %675 = vrot.lane.b32.xlu1 %v673_v54, %s1366_s3  ;;  %p1342_p0 = scmp.ne.s32.totalorder %s1069_s4, %s1341_s11  ;;  %p1347_p2 = scmp.lt.s32.totalorder %s1341_s11, %s1341_s11 }
 0xd0f   :  { %p1348_p3 = por %p1347_p2, %p1346_p1 }
 0xd11   :  { %p1349_p4 = pnand %p1348_p3, %p1342_p0 }
 0xd7f   :  { %v676_v55 = vpop.permute.xlu1 %675 }
 0xd80   :  { %1237 = vmatmul.mubr.msk.f32.vlgmr.msra.gmra.mxu1 %vm175_vm2, %v676_v55 }
 0xd81   :  { %1251 = vmatpush3.msra.mxu1 %v1409_v1  ;;  %1258 = vmatprep.mubr.msk.f32.mxu1 %vm1364_vm1, %v1363_v3 }
 0xd82   :  { %1252 = vmatprep.subr.mxu1 %v1363_v3 }
 0xd83   :  { %1253 = vmatpush3.msra.mxu1 %v1422_v5 }
 0xd84   :  { %1254 = vmatprep.subr.mxu1 %v1363_v3 }
 0xd85   :  { %1255 = vmatpush3.msra.mxu1 %v1432_v7 }
 0xd86   :  { %1256 = vmatprep.subr.mxu1 %v1363_v3 }
 0xd87   :  { %1257 = vmatpush3.msra.mxu1 %v1440_v8 }
 0xe40   :  { %v745_v60 = vpop.f32.mrf.mxu1 }
 0xe41   :  { %v749_v1 = vadd.f32 %v745_v60, %v158_v57 }
 0xe42   :  { %v1238_v61 = vpop.f32.mrf.mxu1 }
 0xe43   :  { %1317 = vtanh.f32 %v749_v1  ;;  %v1095_v63 = vmul.f32 -1.442695, %v749_v1 }
 0xe45   :  { %1319 = vpow2.f32 %v1095_v63 }
 0xe50   :  { %v1318_v62 = vpop.eup %1317 }
 0xe51   :  { %759 = vrot.lane.b32.xlu0 %v1318_v62, %s1365_s13 }
 0xe52   :  { %v1320_v5 = vpop.eup %1319 }
 0xe53   :  { %v753_v0 = vadd.f32 1.0, %v1320_v5 }
 0xe55   :  { %1321 = vrcp.f32 %v753_v0 }
 0xe62   :  { %v1322_v7 = vpop.eup %1321 }
 0xe63   :  { %v757_v8 = vmul.f32 %v1322_v7, %v667_v51  ;;  %v1100_v51 = vld [vmem:[%s1636_s5] ss:$0 sm:$0xff] }
 0xec3   :  { %v760_v2 = vpop.permute.xlu0 %759 }
 0xec4   :  { %v762_v4 = vmul.f32 %v1322_v7, %v760_v2 }
 0xec6   :  { %764 = vrot.lane.b32.xlu1 %v762_v4, %s1366_s3 }
 0xf38   :  { %v765_v6 = vpop.permute.xlu1 %764 }
 0xf39   :  { %v767_v56 = vadd.f32 %v765_v6, %v757_v8 }
 0xf3b   :  { %1323 = vtanh.f32 %v767_v56 }
 0xf48   :  { %v1324_v9 = vpop.eup %1323 }
 0xf49   :  { %770 = vrot.lane.b32.xlu0 %v1324_v9, %s1365_s13 }
 0xfbb   :  { %v771_v11 = vpop.permute.xlu0 %770 }
 0xfbc   :  { %v773_v12 = vmul.f32 %v1322_v7, %v771_v11 }
 0xfbe   :  { %775 = vrot.lane.b32.xlu1 %v773_v12, %s1366_s3 }
0x1030   :  { %v776_v13 = vpop.permute.xlu1 %775 }
0x1031   :  { %1248 = vmatmul.mubr.msk.f32.vlgmr.msra.gmra.mxu0 %vm175_vm2, %v776_v13 }
0x1032   :  { %1269 = vmatprep.mubr.msk.f32.mxu0 %vm1364_vm1, %v1363_v3  ;;  %1262 = vmatpush3.msra.mxu0 %v977_v58 }
0x1033   :  { %1263 = vmatprep.subr.mxu0 %v1363_v3 }
0x1034   :  { %1264 = vmatpush3.msra.mxu0 %v976_v44 }
0x1035   :  { %1265 = vmatprep.subr.mxu0 %v1363_v3 }
0x1036   :  { %1266 = vmatpush3.msra.mxu0 %v975_v45 }
0x1037   :  { %1267 = vmatprep.subr.mxu0 %v1363_v3 }
0x1038   :  { %1268 = vmatpush3.msra.mxu0 %v974_v46 }
0x10f1   :  { %v845_v15 = vpop.f32.mrf.mxu0 }
0x10f2   :  { %v849_v16 = vadd.f32 %v845_v15, %v163_v14 }
0x10f3   :  { %v1249_v17 = vpop.f32.mrf.mxu0 }
0x10f4   :  { %1325 = vtanh.f32 %v849_v16  ;;  %v1097_v19 = vmul.f32 -1.442695, %v849_v16 }
0x10f6   :  { %1327 = vpow2.f32 %v1097_v19 }
0x1101   :  { %v1326_v18 = vpop.eup %1325 }
0x1102   :  { %859 = vrot.lane.b32.xlu0 %v1326_v18, %s1365_s13 }
0x1103   :  { %v1328_v20 = vpop.eup %1327 }
0x1104   :  { %v853_v21 = vadd.f32 1.0, %v1328_v20 }
0x1106   :  { %1329 = vrcp.f32 %v853_v21 }
0x1113   :  { %v1330_v22 = vpop.eup %1329 }
0x1114   :  { %v857_v25 = vmul.f32 %v1330_v22, %v767_v56 }
0x1174   :  { %v860_v23 = vpop.permute.xlu0 %859 }
0x1175   :  { %v862_v24 = vmul.f32 %v1330_v22, %v860_v23 }
0x1177   :  { %864 = vrot.lane.b32.xlu1 %v862_v24, %s1366_s3 }
0x11e9   :  { %v865_v26 = vpop.permute.xlu1 %864 }
0x11ea   :  { %v867_v59 = vadd.f32 %v865_v26, %v857_v25 }
0x11ec   :  { %1331 = vtanh.f32 %v867_v59 }
0x11f9   :  { %v1332_v27 = vpop.eup %1331 }
0x11fa   :  { %870 = vrot.lane.b32.xlu0 %v1332_v27, %s1365_s13 }
0x126c   :  { %v871_v28 = vpop.permute.xlu0 %870 }
0x126d   :  { %v873_v29 = vmul.f32 %v1330_v22, %v871_v28 }
0x126f   :  { %875 = vrot.lane.b32.xlu1 %v873_v29, %s1366_s3 }
0x12e1   :  { %v876_v30 = vpop.permute.xlu1 %875 }
0x12e2   :  { %1259 = vmatmul.mubr.msk.f32.vlgmr.msra.gmra.mxu1 %vm175_vm2, %v876_v30 }
0x13a2   :  { %v945_v32 = vpop.f32.mrf.mxu1 }
0x13a3   :  { %v949_v33 = vadd.f32 %v945_v32, %v168_v31 }
0x13a4   :  { %v1260_v34 = vpop.f32.mrf.mxu1 }
0x13a5   :  { %1333 = vtanh.f32 %v949_v33  ;;  %v1099_v36 = vmul.f32 -1.442695, %v949_v33 }
0x13a7   :  { %1335 = vpow2.f32 %v1099_v36 }
0x13b2   :  { %v1334_v35 = vpop.eup %1333 }
0x13b3   :  { %959 = vrot.lane.b32.xlu0 %v1334_v35, %s1365_s13 }
0x13b4   :  { %v1336_v37 = vpop.eup %1335 }
0x13b5   :  { %v953_v38 = vadd.f32 1.0, %v1336_v37 }
0x13b7   :  { %1337 = vrcp.f32 %v953_v38 }
0x13c4   :  { %v1338_v39 = vpop.eup %1337 }
0x13c5   :  { %v957_v42 = vmul.f32 %v1338_v39, %v867_v59 }
0x1425   :  { %v960_v40 = vpop.permute.xlu0 %959 }
0x1426   :  { %v962_v41 = vmul.f32 %v1338_v39, %v960_v40 }
0x1428   :  { %964 = vrot.lane.b32.xlu1 %v962_v41, %s1366_s3 }
0x149a   :  { %v965_v43 = vpop.permute.xlu1 %964 }
0x149b   :  { %v967_v10 = vadd.f32 %v965_v43, %v957_v42 }
0x149d   :  { %1339 = vtanh.f32 %v967_v10 }
0x14aa   :  { %v1340_v47 = vpop.eup %1339 }
0x14ab   :  { %970 = vrot.lane.b32.xlu0 %v1340_v47, %s1365_s13 }
0x151d   :  { %v971_v48 = vpop.permute.xlu0 %970 }
0x151e   :  { %v973_v49 = vmul.f32 %v1338_v39, %v971_v48 }
0x1520   :  { %986 = vrot.lane.b32.xlu1 %v973_v49, %s1366_s3 }
0x1592   :  { %v987_v50 = vpop.permute.xlu1 %986 }
0x1593   :  { %1270 = vmatmul.mubr.msk.f32.vlgmr.msra.gmra.mxu0 %vm175_vm2, %v987_v50 }
0x1653   :  { %v1056_v52 = vpop.f32.mrf.mxu0 }
0x1654   :  { %v1057_v3 = vadd.f32 %v1100_v51, %v1056_v52 }
0x1655   :  { %v1271_v53 = vpop.f32.mrf.mxu0 }
0x1656   :  { %1061 = vst.msk [vmem:[#allocation2] sm:$0xff] %vm1060_vm3, %v1057_v3 }
0x1657   :  { %1352 = shalt.err (!%p1349_p4)
}
0x1658   :  { %1071 = dma.vmem_to_hbm [thread:$0]  %s1069_s4, 128, %s1637_s6, [#allocation3]  }
0x1659   :  { %1361 = dma.done.wait [#allocation3], 128  }
0x165a   :  { %1362 = vsyncadd [#allocation3], 4294967168 }
0x165b   :  { %1075 = vsyncpa [#allocation3], 1 }

</bundles_post_ra>
